<compile_context>
chip_gen: v7x
topology: tpu7x:2x2x1
jax: 0.10.0
libtpu: 0.0.40
codegen_flags: <defaults>
</compile_context>

<pallas_src>
import functools
import math

import jax
import jax.numpy as jnp
from jax import lax
from jax.experimental import pallas as pl
from jax.experimental.pallas import tpu as pltpu


# Safe on all three generations: <= physical VMEM on v7x (64 MiB), raises
# v5e's 16 MiB default scoped limit, matches v6e/v7x default scoped limit.
_VMEM_LIMIT_BYTES = 32 * 1024 * 1024


# ----------------------------------------------------------------------------
# Activation helper (fused into the kernels)
# ----------------------------------------------------------------------------
def _apply_activation(acc, activation, elu_alpha=1.0):
    if activation == "relu":
        return jnp.maximum(acc, 0.0)
    if activation == "elu":
        # expm1 on the clamped negative branch: accurate near 0, no inf in the
        # dead branch.
        return jnp.where(acc > 0.0, acc, elu_alpha * jnp.expm1(jnp.minimum(acc, 0.0)))
    return acc


# ----------------------------------------------------------------------------
# Fast path kernel:  o[b] = act(W @ x[b] + bias)   on (B, K, S) inputs
# ----------------------------------------------------------------------------
def _linear_nc_kernel(x_ref, w_ref, b_ref, o_ref, *, batch_tile, k_dim,
                      activation, elu_alpha):
    # x_ref: (Bt, K, tS)  w_ref: (N, K)  b_ref: (N, 1)  o_ref: (Bt, N, tS)
    w32 = w_ref[...].astype(jnp.float32)
    bias = b_ref[...].astype(jnp.float32)          # (N, 1) broadcasts over lanes
    for b in range(batch_tile):                    # static unroll (Bt <= 8)
        xb = x_ref[b].astype(jnp.float32)          # (K, tS)
        if k_dim <= 8:
            # Tiny contraction: unrolled VPU MAC; VALU slots are otherwise
            # idle, so this is cheaper than the MXU push/pop round-trip.
            acc = w32[:, 0:1] * xb[0:1, :]
            for k in range(1, k_dim):
                acc = acc + w32[:, k:k + 1] * xb[k:k + 1, :]
        else:
            acc = jnp.dot(w32, xb, preferred_element_type=jnp.float32)
        acc = acc + bias
        acc = _apply_activation(acc, activation, elu_alpha)
        o_ref[b] = acc.astype(o_ref.dtype)


def pallas_linear_channels(x3d, weight, bias, *, activation=None, elu_alpha=1.0):
    """x3d: (B, K, S); weight: (N, K) torch layout; bias: (N,) -> (B, N, S)."""
    B, K, S = x3d.shape
    N = weight.shape[0]
    itemsize = x3d.dtype.itemsize
    b2d = bias.reshape(N, 1)

    # Lane tile over S: multiples of 128 up to 512, else the full extent.
    tS = min(S, 512) if S % 128 == 0 else S

    # Batch tile: amortize per-grid-step overhead (~0.35 us) while keeping the
    # double-buffered x/out slabs within a few MiB of VMEM, and keep >= 2 grid
    # steps when possible so both v7x TensorCores get work.
    slab_bytes = 2 * (K + N) * tS * itemsize       # per batch element (2x-buffered)
    bt = max(1, min(B, 8, (4 * 1024 * 1024) // max(slab_bytes, 1)))
    if B >= 2 and pl.cdiv(B, bt) * pl.cdiv(S, tS) < 2:
        bt = pl.cdiv(B, 2)

    grid = (pl.cdiv(B, bt), pl.cdiv(S, tS))

    kernel = functools.partial(_linear_nc_kernel, batch_tile=bt, k_dim=K,
                               activation=activation, elu_alpha=elu_alpha)
    cost = pl.CostEstimate(
        flops=2 * B * N * K * S,
        transcendentals=(B * N * S) if activation == "elu" else 0,
        bytes_accessed=itemsize * (B * K * S + B * N * S)
        + weight.dtype.itemsize * (N * K + N),
    )

    return pl.pallas_call(
        kernel,
        out_shape=jax.ShapeDtypeStruct((B, N, S), x3d.dtype),
        grid_spec=pltpu.PrefetchScalarGridSpec(
            num_scalar_prefetch=0,
            grid=grid,
            in_specs=[
                pl.BlockSpec((bt, K, tS), lambda b, s: (b, 0, s)),  # batch/lane slab
                pl.BlockSpec((N, K), lambda b, s: (0, 0)),          # full weight
                pl.BlockSpec((N, 1), lambda b, s: (0, 0)),          # full bias
            ],
            out_specs=pl.BlockSpec((bt, N, tS), lambda b, s: (b, 0, s)),
        ),
        compiler_params=pltpu.CompilerParams(
            dimension_semantics=("parallel", "parallel"),
            vmem_limit_bytes=_VMEM_LIMIT_BYTES),
        cost_estimate=cost,
    )(x3d, weight, b2d)


# ----------------------------------------------------------------------------
# General fallback kernel:  y = act(x @ W.T + b)   on (M, K) inputs
# M/N/K-tiled, f32 accumulator scratch, torch-layout weight (no wrapper .T).
# ----------------------------------------------------------------------------
def _linear_2d_kernel(x_ref, w_ref, b_ref, o_ref, acc_ref, *, activation,
                      elu_alpha):
    # x_ref: (tm, tk)  w_ref: (tn, tk)  b_ref: (1, tn)  o_ref/acc_ref: (tm, tn)
    k = pl.program_id(2)

    @pl.when(k == 0)
    def _():
        acc_ref[...] = jnp.zeros_like(acc_ref)

    # Contract the shared K axis directly on the torch-layout weight.
    acc_ref[...] += lax.dot_general(
        x_ref[...], w_ref[...],
        dimension_numbers=(((1,), (1,)), ((), ())),
        preferred_element_type=jnp.float32)

    @pl.when(k == pl.num_programs(2) - 1)
    def _():
        acc = acc_ref[...] + b_ref[...].astype(jnp.float32)
        acc = _apply_activation(acc, activation, elu_alpha)
        o_ref[...] = acc.astype(o_ref.dtype)


def _pick_k_tile(K):
    # K is the reduction axis: a ragged last tile would feed garbage into the
    # accumulation, so the tile must divide K exactly (or cover it entirely).
    if K <= 1024:
        return K
    for cand in (1024, 512, 256, 128):
        if K % cand == 0:
            return cand
    # TODO(synk): no 128-aligned divisor of K -- keep the full K extent
    # (correctness over VMEM economy for odd huge K).
    return K


def _pick_n_tile(n_pad):
    if n_pad <= 512:
        return n_pad          # full extent is always a legal block dim
    return 512                # 128-aligned; ragged last N tile is store-masked


def pallas_linear_2d(x2d, weight, bias, *, activation=None, elu_alpha=1.0):
    """x2d: (M, K); weight: (N, K) torch layout; bias: (N,) -> (M, N)."""
    M, K = x2d.shape
    N = weight.shape[0]
    itemsize = x2d.dtype.itemsize

    # Lane-dense stores: out_features < 128 would force masked vst.msk partial
    # stores on every output tile. Pad the (tiny) parameters to 128 lanes and
    # slice the padding off afterwards.
    n_pad = max(N, 128)
    if n_pad != N:
        weight = jnp.pad(weight, ((0, n_pad - N), (0, 0)))
        bias = jnp.pad(bias, (0, n_pad - N))
    b2d = bias.reshape(1, n_pad)

    tm = 512 if M >= 512 else M          # ragged last M tile is store-masked;
    tn = _pick_n_tile(n_pad)             # safe because epilogue is elementwise
    tk = _pick_k_tile(K)                 # (no cross-row reductions).
    grid = (pl.cdiv(M, tm), pl.cdiv(n_pad, tn), K // tk)

    kernel = functools.partial(_linear_2d_kernel, activation=activation,
                               elu_alpha=elu_alpha)
    cost = pl.CostEstimate(
        flops=2 * M * K * n_pad,
        transcendentals=(M * n_pad) if activation == "elu" else 0,
        bytes_accessed=itemsize * (M * K + M * n_pad)
        + weight.dtype.itemsize * (n_pad * K + n_pad),
    )

    y = pl.pallas_call(
        kernel,
        out_shape=jax.ShapeDtypeStruct((M, n_pad), x2d.dtype),
        grid_spec=pltpu.PrefetchScalarGridSpec(
            num_scalar_prefetch=0,
            grid=grid,
            in_specs=[
                pl.BlockSpec((tm, tk), lambda i, j, k: (i, k)),   # x row/K tile
                pl.BlockSpec((tn, tk), lambda i, j, k: (j, k)),   # torch-layout W
                pl.BlockSpec((1, tn), lambda i, j, k: (0, j)),    # bias tile
            ],
            out_specs=pl.BlockSpec((tm, tn), lambda i, j, k: (i, j)),
            scratch_shapes=[pltpu.VMEM((tm, tn), jnp.float32)],
        ),
        compiler_params=pltpu.CompilerParams(
            dimension_semantics=("parallel", "parallel", "arbitrary"),
            vmem_limit_bytes=_VMEM_LIMIT_BYTES),
        cost_estimate=cost,
    )(x2d, weight, b2d)

    if n_pad != N:
        y = y[:, :N]
    return y


# ----------------------------------------------------------------------------
# Fast-path eligibility: in_dim is a contiguous ascending block, out_dim puts
# the feature axis back where that block started, and there is at least one
# trailing (spatial) axis to serve as the lane dimension.
# ----------------------------------------------------------------------------
def _fast_path_params(ndim, in_dim, out_dim):
    if in_dim is None or out_dim is None or out_dim < 0:
        return None
    dims = tuple(in_dim)
    if len(dims) == 0:
        return None
    if dims != tuple(range(dims[0], dims[0] + len(dims))):
        return None
    p = dims[0]
    if out_dim != p:
        return None
    if p + len(dims) >= ndim:        # no trailing axes -> use the 2D path
        return None
    return p, len(dims)


# ----------------------------------------------------------------------------
# Linear_Module forward (reshapes in JAX, matmul + bias + activation in Pallas)
# ----------------------------------------------------------------------------
def linear_module_forward(x, weight, bias, *, in_dim=None, out_dim=None,
                          unflatten=None, activation=None, elu_alpha=1.0):
    N = weight.shape[0]

    if in_dim is not None:
        in_dim = tuple(d % x.ndim for d in in_dim)   # normalize negative dims

    fp = _fast_path_params(x.ndim, in_dim, out_dim)
    if fp is not None:
        p, nk = fp
        prefix = x.shape[:p]
        suffix = x.shape[p + nk:]
        K = math.prod(x.shape[p:p + nk])
        B = math.prod(prefix) if prefix else 1
        S = math.prod(suffix)
        # Free reshape (no transpose, no pad): channels stay where they are.
        x3d = x.reshape(B, K, S)
        y3d = pallas_linear_channels(x3d, weight, bias, activation=activation,
                                     elu_alpha=elu_alpha)
        y = y3d.reshape(prefix + (N,) + suffix)
        if unflatten is not None:
            y = y.reshape(prefix + tuple(unflatten) + suffix)
        return y

    # ---- general fallback (arbitrary in_dim / out_dim combinations) ----
    if in_dim is not None:
        keep = tuple(i for i in range(x.ndim) if i not in in_dim)
        x = jnp.transpose(x, keep + in_dim)
        lead = x.shape[: x.ndim - len(in_dim)]
        x = x.reshape(lead + (-1,))

    lead_shape = x.shape[:-1]
    K = x.shape[-1]
    x2d = x.reshape(-1, K)
    # Activation is elementwise, so fusing it before the permute/unflatten
    # below is equivalent to applying it last (as the module does).
    y2d = pallas_linear_2d(x2d, weight, bias, activation=activation,
                           elu_alpha=elu_alpha)
    y = y2d.reshape(lead_shape + (N,))

    if out_dim is not None:
        perm = list(range(y.ndim - 1))
        perm.insert(out_dim, y.ndim - 1)
        y = jnp.transpose(y, tuple(perm))
        if unflatten is not None:
            od = out_dim if out_dim >= 0 else out_dim + y.ndim
            y = y.reshape(y.shape[:od] + tuple(unflatten) + y.shape[od + 1:])
    return y


# ----------------------------------------------------------------------------
# Pure-JAX reference for correctness checking
# ----------------------------------------------------------------------------
def reference_forward(x, weight, bias, *, in_dim=None, out_dim=None,
                      unflatten=None, activation=None, elu_alpha=1.0):
    if in_dim is not None:
        in_dim = tuple(d % x.ndim for d in in_dim)
        keep = tuple(i for i in range(x.ndim) if i not in in_dim)
        x = jnp.transpose(x, keep + in_dim)
        lead = x.shape[: x.ndim - len(in_dim)]
        x = x.reshape(lead + (-1,))
    y = x @ weight.T + bias
    if out_dim is not None:
        perm = list(range(y.ndim - 1))
        perm.insert(out_dim, y.ndim - 1)
        y = jnp.transpose(y, tuple(perm))
        if unflatten is not None:
            od = out_dim if out_dim >= 0 else out_dim + y.ndim
            y = y.reshape(y.shape[:od] + tuple(unflatten) + y.shape[od + 1:])
    if activation == "relu":
        y = jnp.maximum(y, 0.0)
    elif activation == "elu":
        y = jnp.where(y > 0.0, y, elu_alpha * jnp.expm1(jnp.minimum(y, 0.0)))
    return y


if __name__ == "__main__":
    # Module config: Linear_Module(in_features=4, out_features=32,
    #                              in_dim=(1,), out_dim=1, unflatten=(8, 4),
    #                              activation='relu')
    B, C, H, W = 2, 4, 16, 16
    in_features, out_features = C, 32
    in_dim, out_dim, unflatten, activation = (1,), 1, (8, 4), "relu"

    key = jax.random.PRNGKey(0)
    kx, kw, kb = jax.random.split(key, 3)

    # NCHW input, matching the PyTorch module
    x = jax.random.normal(kx, (B, C, H, W), dtype=jnp.float32)
    bound = 1.0 / (in_features ** 0.5)
    weight = jax.random.uniform(kw, (out_features, in_features),
                                minval=-bound, maxval=bound, dtype=jnp.float32)
    bias = jax.random.uniform(kb, (out_features,),
                              minval=-bound, maxval=bound, dtype=jnp.float32)

    # --- fast path (batch/lane-gridded W @ x[b], lane-dense H*W output) ---
    out = linear_module_forward(x, weight, bias, in_dim=in_dim,
                                out_dim=out_dim, unflatten=unflatten,
                                activation=activation)
    out = jax.block_until_ready(out)
    ref = reference_forward(x, weight, bias, in_dim=in_dim, out_dim=out_dim,
                            unflatten=unflatten, activation=activation)
    assert out.shape == (B, 8, 4, H, W), out.shape
    assert jnp.allclose(out, ref, atol=1e-5, rtol=1e-5)

    # --- general fallback (no in_dim/out_dim): exercises ELU fusion and the
    #     lane-padded (N=32 -> 128) output path ---
    x2 = jax.random.normal(jax.random.PRNGKey(1), (8, in_features),
                           dtype=jnp.float32)
    out2 = linear_module_forward(x2, weight, bias, activation="elu")
    out2 = jax.block_until_ready(out2)
    ref2 = reference_forward(x2, weight, bias, activation="elu")
    assert out2.shape == (8, out_features), out2.shape
    assert jnp.allclose(out2, ref2, atol=1e-5, rtol=1e-5)

    # --- fallback with permutes (in_dim/out_dim not fast-path eligible) ---
    out3 = linear_module_forward(x, weight, bias, in_dim=(1,), out_dim=2)
    out3 = jax.block_until_ready(out3)
    ref3 = reference_forward(x, weight, bias, in_dim=(1,), out_dim=2)
    assert out3.shape == (B, H, out_features, W), out3.shape
    assert jnp.allclose(out3, ref3, atol=1e-5, rtol=1e-5)

    print("KERNEL_OK")
</pallas_src>

<mosaic_0001>
module attributes {stable_mosaic.version = 11 : i64} {
  func.func @_linear_nc_kernel(%arg0: i32, %arg1: i32, %arg2: memref<1x4x256xf32, #tpu.memory_space<vmem>>, %arg3: memref<32x4xf32, #tpu.memory_space<vmem>>, %arg4: memref<32x1xf32, #tpu.memory_space<vmem>>, %arg5: memref<1x32x256xf32, #tpu.memory_space<vmem>>) attributes {dimension_semantics = [#tpu.dimension_semantics<parallel>, #tpu.dimension_semantics<parallel>], iteration_bounds = array<i64: 2, 1>, scalar_prefetch = 0 : i64, scratch_operands = 0 : i64, tpu.core_type = #tpu.core_type<tc>, window_params = [{transform_indices = @transform_0, window_bounds = array<i64: 1, 4, 256>}, {pipeline_mode = #tpu.pipeline_mode<synchronous>, transform_indices = @transform_1, window_bounds = array<i64: 32, 4>}, {pipeline_mode = #tpu.pipeline_mode<synchronous>, transform_indices = @transform_2, window_bounds = array<i64: 32, 1>}, {transform_indices = @transform_3, window_bounds = array<i64: 1, 32, 256>}]} {
    %c0 = arith.constant 0 : index
    %c0_0 = arith.constant 0 : index
    %0 = vector.load %arg3[%c0, %c0_0] : memref<32x4xf32, #tpu.memory_space<vmem>>, vector<32x4xf32>
    %c0_1 = arith.constant 0 : index
    %c0_2 = arith.constant 0 : index
    %1 = vector.load %arg4[%c0_1, %c0_2] : memref<32x1xf32, #tpu.memory_space<vmem>>, vector<32x1xf32>
    %c0_3 = arith.constant 0 : index
    %c0_4 = arith.constant 0 : index
    %c0_5 = arith.constant 0 : index
    %2 = vector.load %arg2[%c0_3, %c0_4, %c0_5] : memref<1x4x256xf32, #tpu.memory_space<vmem>>, vector<1x4x256xf32>
    %3 = vector.shape_cast %2 : vector<1x4x256xf32> to vector<4x256xf32>
    %4 = vector.extract_strided_slice %0 {offsets = [0, 0], sizes = [32, 1], strides = [1, 1]} : vector<32x4xf32> to vector<32x1xf32>
    %5 = vector.extract_strided_slice %3 {offsets = [0, 0], sizes = [1, 256], strides = [1, 1]} : vector<4x256xf32> to vector<1x256xf32>
    %6 = vector.broadcast %4 : vector<32x1xf32> to vector<32x256xf32>
    %7 = vector.broadcast %5 : vector<1x256xf32> to vector<32x256xf32>
    %8 = arith.mulf %6, %7 : vector<32x256xf32>
    %9 = vector.extract_strided_slice %0 {offsets = [0, 1], sizes = [32, 1], strides = [1, 1]} : vector<32x4xf32> to vector<32x1xf32>
    %10 = vector.extract_strided_slice %3 {offsets = [1, 0], sizes = [1, 256], strides = [1, 1]} : vector<4x256xf32> to vector<1x256xf32>
    %11 = vector.broadcast %9 : vector<32x1xf32> to vector<32x256xf32>
    %12 = vector.broadcast %10 : vector<1x256xf32> to vector<32x256xf32>
    %13 = arith.mulf %11, %12 : vector<32x256xf32>
    %14 = arith.addf %8, %13 : vector<32x256xf32>
    %15 = vector.extract_strided_slice %0 {offsets = [0, 2], sizes = [32, 1], strides = [1, 1]} : vector<32x4xf32> to vector<32x1xf32>
    %16 = vector.extract_strided_slice %3 {offsets = [2, 0], sizes = [1, 256], strides = [1, 1]} : vector<4x256xf32> to vector<1x256xf32>
    %17 = vector.broadcast %15 : vector<32x1xf32> to vector<32x256xf32>
    %18 = vector.broadcast %16 : vector<1x256xf32> to vector<32x256xf32>
    %19 = arith.mulf %17, %18 : vector<32x256xf32>
    %20 = arith.addf %14, %19 : vector<32x256xf32>
    %21 = vector.extract_strided_slice %0 {offsets = [0, 3], sizes = [32, 1], strides = [1, 1]} : vector<32x4xf32> to vector<32x1xf32>
    %22 = vector.extract_strided_slice %3 {offsets = [3, 0], sizes = [1, 256], strides = [1, 1]} : vector<4x256xf32> to vector<1x256xf32>
    %23 = vector.broadcast %21 : vector<32x1xf32> to vector<32x256xf32>
    %24 = vector.broadcast %22 : vector<1x256xf32> to vector<32x256xf32>
    %25 = arith.mulf %23, %24 : vector<32x256xf32>
    %26 = arith.addf %20, %25 : vector<32x256xf32>
    %27 = vector.broadcast %1 : vector<32x1xf32> to vector<32x256xf32>
    %28 = arith.addf %26, %27 : vector<32x256xf32>
    %cst = arith.constant 0.000000e+00 : f32
    %29 = vector.broadcast %cst : f32 to vector<32x256xf32>
    %30 = arith.maximumf %28, %29 : vector<32x256xf32>
    %c0_6 = arith.constant 0 : index
    %c0_7 = arith.constant 0 : index
    %c0_8 = arith.constant 0 : index
    %31 = vector.load %arg5[%c0_6, %c0_7, %c0_8] : memref<1x32x256xf32, #tpu.memory_space<vmem>>, vector<1x32x256xf32>
    %32 = vector.shape_cast %31 : vector<1x32x256xf32> to vector<32x256xf32>
    %33 = vector.shape_cast %30 : vector<32x256xf32> to vector<1x32x256xf32>
    tpu.vector_store %arg5[%c0_6, %c0_7, %c0_8], %33 {strides = array<i32>} : memref<1x32x256xf32, #tpu.memory_space<vmem>>, vector<1x32x256xf32>,
    return
  }
  func.func @transform_0(%arg0: i32, %arg1: i32) -> (i32, i32, i32) {
    %c0_i32 = arith.constant 0 : i32
    %c0_i32_0 = arith.constant 0 : i32
    return %arg0, %c0_i32, %arg1 : i32, i32, i32
  }
  func.func @transform_1(%arg0: i32, %arg1: i32) -> (i32, i32) {
    %c0_i32 = arith.constant 0 : i32
    %c0_i32_0 = arith.constant 0 : i32
    %c0_i32_1 = arith.constant 0 : i32
    return %c0_i32, %c0_i32_0 : i32, i32
  }
  func.func @transform_2(%arg0: i32, %arg1: i32) -> (i32, i32) {
    %c0_i32 = arith.constant 0 : i32
    %c0_i32_0 = arith.constant 0 : i32
    %c0_i32_1 = arith.constant 0 : i32
    return %c0_i32, %c0_i32_0 : i32, i32
  }
  func.func @transform_3(%arg0: i32, %arg1: i32) -> (i32, i32, i32) {
    %c0_i32 = arith.constant 0 : i32
    %c0_i32_0 = arith.constant 0 : i32
    return %arg0, %c0_i32, %arg1 : i32, i32, i32
  }
}

</mosaic_0001>

<bundles_post_ra>
// kernel: tpu_custom_call.1
= control target key start
LH: loop header
LB: loop body
LE: loop exit
PB: predicated region body
PF: predicated region fallthrough
CT: control target
= control target key end

     0   :  { %8 = vsyncpa [#allocation3], 0  ;;  %s900_s0 = inlined_call_operand.vmem [shape: f32[2,4,256], index: 0, kind: input, shape index: {}]   ;;  %s901_s1 = inlined_call_operand.vmem [shape: f32[32,4], index: 1, kind: input, shape index: {}]   ;;  %s902_s2 = inlined_call_operand.vmem [shape: f32[32,1], index: 2, kind: input, shape index: {}]   ;;  %s903_s3 = inlined_call_operand.hbm [shape: f32[2,32,256], index: 3, kind: output, shape index: {}]  }
   0x1   :  { %10 = vsyncpa [#allocation3 + $0x1], 0  ;;  %s738_s12 = smov 0   ;;  %s740_s13 = smov 0  }
   0x2   :  { %s742_s14 = smov 0   ;;  %s744_s15 = smov 0  }
   0x3   :  { %s746_s16 = smov 0   ;;  %s748_s17 = smov 0  }
   0x4 LB: > { %s545_s18 = sadd.s32 4294967295, %s709_s17   ;;  %s546_s19 = sadd.s32 4294967294, %s709_s17   ;;  %s709_s17 = sphi %s748_s17, %s16_s17   ;;  %s705_s16 = sphi %s746_s16, %s910_s16   ;;  %s701_s15 = sphi %s744_s15, %s909_s15   ;;  %s697_s14 = sphi %s742_s14, %s908_s14   ;;  %s693_s13 = sphi %s740_s13, %s907_s13   ;;  %s689_s12 = sphi %s738_s12, %s906_s12  }
   0x5   : > { %s28_s20 = sadd.s32 1, %s705_s16  ;;  %s107_s21 = sadd.s32 1, %s697_s14 }
   0x6   : > { %p30_p0 = scmp.ge.s32.totalorder %s28_s20, 2  ;;  %p117_p1 = scmp.ne.s32.totalorder %s697_s14, %s693_s13 }
   0x7   : > { %p118_p2 = scmp.eq.s32.totalorder %s545_s18, 1  ;;  %p123_p3 = scmp.ne.s32.totalorder %s693_s13, %s689_s12 }
   0x8   : > { %s912_s20 = smov (%p30_p0, %s28_s20), 0  ;;  %p124_p5 = scmp.eq.s32.totalorder %s546_s19, 1 }
   0x9   : > { %p778_p4 = por %p118_p2, %p117_p1  ;;  %s102_s23 = ssub.s32 %s705_s16, %s912_s20 }
   0xa   : > { %p549_p6 = scmp.ge.s32.totalorder %s709_s17, 1  ;;  %p105_p7 = scmp.eq.s32.totalorder %s102_s23, 0 }
   0xb   : > { %p785_p8 = por %p124_p5, %p123_p3  ;;  %p161_p9 = scmp.lt.s32.totalorder %s709_s17, 3 }
   0xc   : > { %s791_s25 = scalar_select %p105_p7, %s697_s14, %s107_s21  }
   0xd   : > { %p162_p10 = pnand %p549_p6, %p161_p9 }
   0xe   : > { %v202_v0 = vld [vmem:[%s901_s1 + $0x10] sm:$0xff] (!%p162_p10)  ;;  %v200_v1 = vld [vmem:[%s901_s1] sm:$0xff] (!%p162_p10)  ;;  %v711_v2 = vmov (!%p162_p10), 0   ;;  %v203_v3 = vld [vmem:[%s901_s1 + $0x18] sm:$0xff] (!%p162_p10)  ;;  %v712_v5 = vmov (!%p162_p10), 1   ;;  %v713_v6 = vmov (!%p162_p10), 2   ;;  %v230_v16 = vlaneseq (!%p162_p10) }
   0xf   : > { %165 = sbr.rel (%p162_p10) target bundleno = 211 (0xd3), region = 32  ;;  %622 = vset.pattern.permute.xlu1 (!%p162_p10), %v711_v2  ;;  %621 = vset.pattern.permute.xlu0 (!%p162_p10), %v711_v2  ;;  %v201_v4 = vld [vmem:[%s901_s1 + $0x8] sm:$0xff] (!%p162_p10)  ;;  %v714_v7 = vmov (!%p162_p10), 3   ;;  %v204_v9 = vld [vmem:[%s902_s2] sm:$0xff] (!%p162_p10)  ;;  %v206_v10 = vld [vmem:[%s902_s2 + $0x10] sm:$0xff] (!%p162_p10)  ;;  %p190_p11 = scmp.lt.s32.totalorder (!%p162_p10), %s701_s15, 1 }
  0x10   : > { %221 = vperm.xlu1 (!%p162_p10), %622, %v202_v0   ;;  %211 = vperm.xlu0 (!%p162_p10), %621, %v200_v1   ;;  %v205_v8 = vld [vmem:[%s902_s2 + $0x8] sm:$0xff] (!%p162_p10)  ;;  %v207_v11 = vld [vmem:[%s902_s2 + $0x18] sm:$0xff] (!%p162_p10)  ;;  %v231_v19 = vshrl.u32 (!%p162_p10), %v230_v16, 7  ;;  %s186_s30 = sand.u32 (!%p162_p10), 1, %s693_s13   ;;  %s559_s6 = sshll.u32 (!%p162_p10), %s701_s15, 10 }
  0x11   : > { %s550_s4 = sshll.u32 (!%p162_p10), %s186_s30, 6  ;;  %s846_s10 = scalar_lea.hbm (!%p162_p10), %s903_s3, %s559_s6 }
  0x12   : > { %v274_v22 = vsub.s32 (!%p162_p10), 1, %v231_v19  ;;  %v278_v23 = vsub.s32 (!%p162_p10), 5, %v231_v19  ;;  %v232_v24 = vsub.s32 (!%p162_p10), 0, %v231_v19  ;;  %v236_v25 = vsub.s32 (!%p162_p10), 4, %v231_v19  ;;  %s833_s5 = scalar_lea.vmem (!%p162_p10), [#allocation2], %s550_s4  ;;  %s715_s18 = smov (!%p162_p10), [#allocation2]  }
  0x13   : > { %v324_v26 = vsub.s32 (!%p162_p10), 2, %v231_v19  ;;  %v328_v27 = vsub.s32 (!%p162_p10), 6, %v231_v19  ;;  %v374_v37 = vsub.s32 (!%p162_p10), 3, %v231_v19  ;;  %v378_v38 = vsub.s32 (!%p162_p10), 7, %v231_v19  ;;  %s466_s7 = sshll.u32 (!%p162_p10), %s833_s5, 4  ;;  %s635_s19 = sshll.u32 (!%p162_p10), %s715_s18, 4  ;;  %s848_s7 = int_to_ptr.vmem [resolvable:$true] %s466_s7  ;;  %s636_s19 = int_to_ptr.vmem [resolvable:$false] %s635_s19 }
  0x14   : > { %226 = vperm.xlu1 (!%p162_p10), %622, %v203_v3   ;;  %216 = vperm.xlu0 (!%p162_p10), %621, %v201_v4   ;;  %s631_s11 = scalar_lea.vmem (!%p162_p10), %s848_s7, 1024  ;;  %s637_s21 = scalar_lea.vmem (!%p162_p10), %s636_s19, 2048 }
  0x15   : > { %p632_p12 = scmp.ne.s32.totalorder (!%p162_p10), %s848_s7, %s631_s11  ;;  %p638_p1 = scmp.lt.s32.totalorder (!%p162_p10), %s848_s7, %s636_s19 }
  0x16   : > { %s191_s23 = scalar_select %p190_p11, %s701_s15, 1 }
  0x17   : > { %s854_s15 = scalar_lea.sflag [#allocation3], %s186_s30  ;;  %p633_p13 = pnand %p632_p12, %p778_p4 }
  0x18   : > { %624 = vset.pattern.permute.xlu1 %v712_v5  ;;  %623 = vset.pattern.permute.xlu0 %v712_v5  ;;  %s558_s26 = sshll.u32 %s191_s23, 3  ;;  %p639_p2 = scmp.lt.s32.totalorder %s637_s21, %s631_s11 }
  0x19   : > { %261 = vperm.xlu1 %624, %v201_v4   ;;  %257 = vperm.xlu0 %623, %v200_v1   ;;  %s197_s29 = scalar_lea.vmem %s900_s0, %s558_s26  ;;  %p634_p0 = pneg %p633_p13 }
  0x1a   : > { %v208_v28 = vld [vmem:[%s197_s29] sm:$0xff]  ;;  %p640_p3 = por %p639_p2, %p638_p1 }
  0x1b   : > { %v275_v29 = vrot.slane %v208_v28, %v274_v22  ;;  %v279_v30 = vrot.slane %v208_v28, %v278_v23  ;;  %v233_v33 = vrot.slane %v208_v28, %v232_v24  ;;  %v237_v34 = vrot.slane %v208_v28, %v236_v25 }
  0x1c   : > { %v325_v35 = vrot.slane %v208_v28, %v324_v26  ;;  %v329_v36 = vrot.slane %v208_v28, %v328_v27  ;;  %v375_v47 = vrot.slane %v208_v28, %v374_v37  ;;  %v379_v48 = vrot.slane %v208_v28, %v378_v38  ;;  %p641_p5 = pnand %p640_p3, %p634_p0 }
  0x1d   : > { %265 = vperm.xlu1 %624, %v202_v0   ;;  %269 = vperm.xlu0 %623, %v203_v3   ;;  %v285_v39 = vrot.slane %v275_v29, %v274_v22  ;;  %v289_v40 = vrot.slane %v279_v30, %v274_v22  ;;  %v243_v43 = vrot.slane %v233_v33, %v232_v24 }
  0x1e   : > { %v247_v44 = vrot.slane %v237_v34, %v232_v24  ;;  %v335_v45 = vrot.slane %v325_v35, %v324_v26  ;;  %v339_v46 = vrot.slane %v329_v36, %v324_v26  ;;  %v385_v63 = vrot.slane %v375_v47, %v374_v37 }
  0x21   : > { %625 = vset.pattern.permute.xlu1 %v713_v6  ;;  %626 = vset.pattern.permute.xlu0 %v713_v6 }
  0x22   : > { %307 = vperm.xlu1 %625, %v200_v1   ;;  %311 = vperm.xlu0 %626, %v201_v4  }
  0x26   : > { %315 = vperm.xlu1 %625, %v202_v0   ;;  %627 = vset.pattern.permute.xlu0 %v714_v7 }
  0x27   : > { %357 = vperm.xlu0 %627, %v200_v1  }
  0x2a   : > { %319 = vperm.xlu1 %625, %v203_v3  }
  0x2b   : > { %369 = vperm.xlu0 %627, %v203_v3  }
  0x2e   : > { %628 = vset.pattern.permute.xlu1 %v714_v7 }
  0x2f   : > { %361 = vperm.xlu1 %628, %v201_v4   ;;  %630 = vset.pattern.permute.xlu0 %v711_v2 }
  0x30   : > { %413 = vperm.xlu0 %630, %v205_v8  }
  0x33   : > { %365 = vperm.xlu1 %628, %v202_v0   ;;  %v389_v0 = vrot.slane %v379_v48, %v374_v37 }
  0x37   : > { %629 = vset.pattern.permute.xlu1 %v711_v2 }
  0x38   : > { %408 = vperm.xlu1 %629, %v204_v9  }
  0x3c   : > { %418 = vperm.xlu1 %629, %v206_v10  }
  0x40   : > { %423 = vperm.xlu1 %629, %v207_v11  }
  0x8f   : > { %v222_v12 = vpop.permute.xlu1 %221  ;;  %v212_v13 = vpop.permute.xlu0 %211 }
  0x90   : > { %v248_v56 = vmul.f32 %v243_v43, %v212_v13  ;;  %v249_v57 = vmul.f32 %v247_v44, %v212_v13  ;;  %v252_v1 = vmul.f32 %v243_v43, %v222_v12  ;;  %v253_v2 = vmul.f32 %v247_v44, %v222_v12 }
  0x93   : > { %v818_v14 = vpop.permute.xlu1 %226  ;;  %v217_v15 = vpop.permute.xlu0 %216 }
  0x94   : > { %v250_v49 = vmul.f32 %v243_v43, %v217_v15  ;;  %v251_v50 = vmul.f32 %v247_v44, %v217_v15 }
  0x98   : > { %v262_v17 = vpop.permute.xlu1 %261  ;;  %v258_v18 = vpop.permute.xlu0 %257 }
  0x99   : > { %v292_v51 = vmul.f32 %v285_v39, %v262_v17  ;;  %v293_v52 = vmul.f32 %v289_v40, %v262_v17  ;;  %v290_v58 = vmul.f32 %v285_v39, %v258_v18  ;;  %v291_v59 = vmul.f32 %v289_v40, %v258_v18 }
  0x9a   : > { %v254_v17 = vmul.f32 %v243_v43, %v818_v14  ;;  %v255_v18 = vmul.f32 %v247_v44, %v818_v14 }
  0x9b   : > { %v300_v61 = vadd.f32 %v292_v51, %v250_v49  ;;  %v301_v62 = vadd.f32 %v293_v52, %v251_v50  ;;  %v298_v10 = vadd.f32 %v290_v58, %v248_v56  ;;  %v299_v11 = vadd.f32 %v291_v59, %v249_v57 }
  0x9c   : > { %v266_v20 = vpop.permute.xlu1 %265  ;;  %v821_v21 = vpop.permute.xlu0 %269 }
  0x9d   : > { %v294_v3 = vmul.f32 %v285_v39, %v266_v20  ;;  %v295_v4 = vmul.f32 %v289_v40, %v266_v20  ;;  %v296_v20 = vmul.f32 %v285_v39, %v821_v21  ;;  %v297_v22 = vmul.f32 %v289_v40, %v821_v21 }
  0x9f   : > { %v302_v26 = vadd.f32 %v294_v3, %v252_v1  ;;  %v303_v27 = vadd.f32 %v295_v4, %v253_v2  ;;  %v304_v21 = vadd.f32 %v296_v20, %v254_v17  ;;  %v305_v40 = vadd.f32 %v297_v22, %v255_v18 }
  0xa1   : > { %v308_v31 = vpop.permute.xlu1 %307  ;;  %v312_v32 = vpop.permute.xlu0 %311 }
  0xa2   : > { %v342_v54 = vmul.f32 %v335_v45, %v312_v32  ;;  %v343_v55 = vmul.f32 %v339_v46, %v312_v32  ;;  %v340_v13 = vmul.f32 %v335_v45, %v308_v31  ;;  %v341_v15 = vmul.f32 %v339_v46, %v308_v31 }
  0xa4   : > { %v350_v6 = vadd.f32 %v342_v54, %v300_v61  ;;  %v351_v7 = vadd.f32 %v343_v55, %v301_v62  ;;  %v348_v30 = vadd.f32 %v340_v13, %v298_v10  ;;  %v349_v31 = vadd.f32 %v341_v15, %v299_v11 }
  0xa5   : > { %v316_v41 = vpop.permute.xlu1 %315 }
  0xa6   : > { %v358_v42 = vpop.permute.xlu0 %357  ;;  %v344_v32 = vmul.f32 %v335_v45, %v316_v41  ;;  %v345_v33 = vmul.f32 %v339_v46, %v316_v41 }
  0xa7   : > { %v390_v23 = vmul.f32 %v385_v63, %v358_v42  ;;  %v391_v24 = vmul.f32 %v389_v0, %v358_v42 }
  0xa8   : > { %v352_v41 = vadd.f32 %v344_v32, %v302_v26  ;;  %v353_v44 = vadd.f32 %v345_v33, %v303_v27 }
  0xa9   : > { %v320_v53 = vpop.permute.xlu1 %319  ;;  %v398_v39 = vadd.f32 %v390_v23, %v348_v30  ;;  %v399_v43 = vadd.f32 %v391_v24, %v349_v31 }
  0xaa   : > { %v370_v60 = vpop.permute.xlu0 %369  ;;  %v346_v14 = vmul.f32 %v335_v45, %v320_v53  ;;  %v347_v34 = vmul.f32 %v339_v46, %v320_v53 }
  0xab   : > { %v396_v49 = vmul.f32 %v385_v63, %v370_v60  ;;  %v397_v50 = vmul.f32 %v389_v0, %v370_v60 }
  0xac   : > { %v354_v47 = vadd.f32 %v346_v14, %v304_v21  ;;  %v355_v48 = vadd.f32 %v347_v34, %v305_v40 }
  0xae   : > { %v362_v5 = vpop.permute.xlu1 %361  ;;  %v404_v61 = vadd.f32 %v396_v49, %v354_v47  ;;  %v405_v62 = vadd.f32 %v397_v50, %v355_v48 }
  0xaf   : > { %v392_v8 = vmul.f32 %v385_v63, %v362_v5  ;;  %v393_v9 = vmul.f32 %v389_v0, %v362_v5  ;;  %v414_v16 = vpop.permute.xlu0 %413 }
  0xb1   : > { %v400_v12 = vadd.f32 %v392_v8, %v350_v6  ;;  %v401_v19 = vadd.f32 %v393_v9, %v351_v7 }
  0xb2   : > { %v366_v25 = vpop.permute.xlu1 %365 }
  0xb3   : > { %v428_v28 = vadd.f32 %v414_v16, %v400_v12  ;;  %v429_v29 = vadd.f32 %v414_v16, %v401_v19  ;;  %v394_v37 = vmul.f32 %v385_v63, %v366_v25  ;;  %v395_v38 = vmul.f32 %v389_v0, %v366_v25 }
  0xb5   : > { %v436_v35 = vmax.f32 %v428_v28, 0.0  ;;  %v437_v36 = vmax.f32 %v429_v29, 0.0  ;;  %v402_v53 = vadd.f32 %v394_v37, %v352_v41  ;;  %v403_v54 = vadd.f32 %v395_v38, %v353_v44 }
  0xb7   : > { %444 = vst [vmem:[%s833_s5 + $0x10] sm:$0xff] %v436_v35  ;;  %445 = vst [vmem:[%s833_s5 + $0x18] sm:$0xff] %v437_v36  ;;  %v409_v42 = vpop.permute.xlu1 %408 }
  0xb8   : > { %v426_v45 = vadd.f32 %v409_v42, %v398_v39  ;;  %v427_v46 = vadd.f32 %v409_v42, %v399_v43 }
  0xba   : > { %v434_v51 = vmax.f32 %v426_v45, 0.0  ;;  %v435_v52 = vmax.f32 %v427_v46, 0.0 }
  0xbb   : > { %v419_v55 = vpop.permute.xlu1 %418 }
  0xbc   : > { %442 = vst [vmem:[%s833_s5] sm:$0xff] %v434_v51  ;;  %443 = vst [vmem:[%s833_s5 + $0x8] sm:$0xff] %v435_v52  ;;  %v430_v56 = vadd.f32 %v419_v55, %v402_v53  ;;  %v431_v57 = vadd.f32 %v419_v55, %v403_v54 }
  0xbe   : > { %v438_v58 = vmax.f32 %v430_v56, 0.0  ;;  %v439_v59 = vmax.f32 %v431_v57, 0.0 }
  0xbf   : > { %v424_v60 = vpop.permute.xlu1 %423 }
  0xc0   : > { %446 = vst [vmem:[%s833_s5 + $0x20] sm:$0xff] %v438_v58  ;;  %447 = vst [vmem:[%s833_s5 + $0x28] sm:$0xff] %v439_v59  ;;  %v432_v63 = vadd.f32 %v424_v60, %v404_v61  ;;  %v433_v0 = vadd.f32 %v424_v60, %v405_v62 }
  0xc2   : > { %v440_v1 = vmax.f32 %v432_v63, 0.0  ;;  %v441_v2 = vmax.f32 %v433_v0, 0.0 }
  0xc4   : > { %448 = vst [vmem:[%s833_s5 + $0x30] sm:$0xff] %v440_v1  ;;  %449 = vst [vmem:[%s833_s5 + $0x38] sm:$0xff] %v441_v2 }
  0xc5   : > { %644 = shalt.err (!%p641_p5)
}
  0xc6   : > { %s645_s23 = scalar_lea.hbm %s846_s10, 1024  ;;  %s649_s28 = scalar_lea.hbm %s903_s3, 2048 }
  0xc7   : > { %p646_p6 = scmp.ne.s32.totalorder %s846_s10, %s645_s23  ;;  %p650_p10 = scmp.lt.u32.totalorder %s846_s10, %s903_s3 }
  0xc8   : > { %p651_p11 = scmp.lt.u32.totalorder %s649_s28, %s645_s23  ;;  %p653_p13 = scmp.lt.u32.totalorder %s645_s23, %s846_s10 }
  0xc9   : > { %p647_p7 = pnand %p646_p6, %p778_p4 }
  0xca   : > { %p652_p12 = por %p651_p11, %p650_p10 }
  0xcb   : > { %p648_p9 = pneg %p647_p7 }
  0xcc   : > { %p654_p0 = por %p653_p13, %p652_p12 }
  0xce   : > { %p655_p1 = pnand %p654_p0, %p648_p9 }
  0xd0   : > { %658 = shalt.err (!%p655_p1)
}
  0xd1   : > { %s716_s4 = smov 256   ;;  %s717_s5 = smov 16  }
  0xd2   : > { %560 = dma.vmem_to_hbm [thread:$0]  (%p778_p4), %s848_s7, 1024, %s846_s10, %s854_s15, %s716_s4, %s716_s4, %s717_s5  }
  0xd3 PF: > { %p566_p2 = scmp.ge.s32.totalorder %s709_s17, 2  ;;  %s481_s6 = sand.u32 1, %s689_s12  }
  0xd4   : > { %s482_s8 = scalar_lea.sflag [#allocation3], %s481_s6 }
  0xd5   : > { %p563_p3 = pnand %p566_p2, %p785_p8 }
  0xd7   : > { %684 = dma.done.wait (!%p563_p3), %s482_s8, 1024  }
  0xd8   : > { %686 = vsyncadd (!%p563_p3), %s482_s8, 4294966272  ;;  %s16_s17 = sadd.s32 1, %s709_s17   ;;  %s906_s12 = smov %s693_s13 }
  0xd9   : > { %p13_p5 = scmp.ge.s32.totalorder %s16_s17, 4   ;;  %s907_s13 = smov %s697_s14 }
  0xda   : > { %s908_s14 = smov %s791_s25  ;;  %s909_s15 = smov %s705_s16 }
  0xdb   : > { %s910_s16 = smov %s912_s20  ;;  %15 = sbr.rel (!%p13_p5) target bundleno = 4 (0x4), region = 67 }
  0xe2   :  { %487 = vsyncpa [#allocation3], 1 }
  0xe3   :  { %489 = vsyncpa [#allocation3 + $0x1], 1 }

</bundles_post_ra>
